<compile_context>
chip_gen: v6e
topology: v6e:2x2x1
jax: 0.10.0
libtpu: 0.0.40
codegen_flags: <defaults>
</compile_context>

<pallas_src>
import jax
import jax.numpy as jnp
from jax.experimental import pallas as pl
from jax.experimental.pallas import tpu as pltpu


def _round_up(x, m):
    return ((x + m - 1) // m) * m


def _softplus(x):
    # torch.nn.functional.softplus (beta=1, threshold=20):
    #   x if x > 20 else log1p(exp(x)); clamp exp arg to avoid overflow.
    return jnp.where(x > 20.0, x, jnp.log1p(jnp.exp(jnp.minimum(x, 20.0))))


def decoder_kernel(z_ref, w1_ref, b1_ref, w2_ref, b2_ref, out_ref):
    # fc1: z arrives as f32 (no wrapper-side cast pass over HBM); the bf16
    # cast is a cheap VPU op hidden under the z DMA / MXU work.
    h = jnp.dot(z_ref[...].astype(jnp.bfloat16), w1_ref[...],
                preferred_element_type=jnp.float32)
    # Bias add + softplus in f32 on VPU/EUP (v5e has no bf16 VPU/EUP path).
    h = _softplus(h + b1_ref[...])
    # fc21: bf16 MXU operands, f32 accumulation.
    o = jnp.dot(h.astype(jnp.bfloat16), w2_ref[...],
                preferred_element_type=jnp.float32)
    out_ref[...] = (o + b2_ref[...]).astype(out_ref.dtype)


def prepare_decoder_params(w1, b1, w2, b2):
    """Pad/cast the decoder parameters ONCE; reuse across forward calls.

    w1: [Z, H], b1: [H], w2: [H, O], b2: [O] -- stored pre-transposed
    relative to PyTorch nn.Linear (fc1.weight is [H, Z], fc21.weight is [O, H]).
    H and O are zero-padded to multiples of 128 for lane-dense intermediates /
    unmasked output stores; w2's padded H rows are zero so padded hidden lanes
    (softplus(0)=log 2) contribute nothing.
    """
    Z, H = w1.shape
    O = w2.shape[1]
    H_pad = _round_up(H, 128)
    O_pad = _round_up(O, 128)

    w1_p = jnp.pad(w1, ((0, 0), (0, H_pad - H))).astype(jnp.bfloat16)
    b1_p = jnp.pad(b1.reshape(1, H), ((0, 0), (0, H_pad - H))).astype(jnp.float32)
    w2_p = jnp.pad(w2, ((0, H_pad - H), (0, O_pad - O))).astype(jnp.bfloat16)
    b2_p = jnp.pad(b2.reshape(1, O), ((0, 0), (0, O_pad - O))).astype(jnp.float32)

    return {"w1": w1_p, "b1": b1_p, "w2": w2_p, "b2": b2_p,
            "z_dim": Z, "hidden_dim": H, "obs_dim": O}


def _vmem_bytes_estimate(tb, z, h_pad, o_pad):
    # Double-buffered z/out tiles + (conservatively double-buffered) weights
    # + the compiler-managed (TB, H_pad) f32 hidden intermediate.
    z_tiles = 2 * tb * z * 4
    out_tiles = 2 * tb * o_pad * 4
    weights = 2 * (z * h_pad * 2 + 8 * h_pad * 4 + h_pad * o_pad * 2 + 8 * o_pad * 4)
    hidden = tb * h_pad * 4
    return z_tiles + out_tiles + weights + hidden


def decoder_apply(z, params, *, tb=512):
    """z: [B, Z] f32, params from prepare_decoder_params -> [B, O] f32."""
    B, Z = z.shape
    assert Z == params["z_dim"], (Z, params["z_dim"])
    O = params["obs_dim"]
    H_pad = params["w1"].shape[1]
    O_pad = params["w2"].shape[1]

    # --- Batch tile selection -------------------------------------------
    # Multiple of 16 (bf16 sublane packing).  Default 512 (~85% of measured
    # HBM roofline).  If the whole batch fits a single tile but B >= 32,
    # split into two grid steps so v7x's second TensorCore gets work.
    tb = max(16, _round_up(tb, 16))
    b16 = _round_up(B, 16)
    if b16 <= tb:
        TB = _round_up((b16 + 1) // 2, 16) if b16 >= 32 else b16
    else:
        TB = tb
    # Keep the total VMEM footprint under 48 MiB (safe on v7x's 64 MiB phys).
    VMEM_CAP = 48 * 1024 * 1024
    while TB > 16 and _vmem_bytes_estimate(TB, Z, H_pad, O_pad) > VMEM_CAP:
        TB = max(16, _round_up(TB // 2, 16))

    B_pad = _round_up(B, TB)
    z_p = z if B_pad == B else jnp.pad(z, ((0, B_pad - B), (0, 0)))
    z_p = z_p.astype(jnp.float32)   # no bf16 cast pass in the wrapper

    grid = (B_pad // TB,)

    cost = pl.CostEstimate(
        flops=2 * B_pad * (Z * H_pad + H_pad * O_pad),
        transcendentals=2 * B_pad * H_pad,          # exp + log1p per hidden elem
        bytes_accessed=(z_p.size * 4
                        + params["w1"].size * 2 + params["w2"].size * 2
                        + params["b1"].size * 4 + params["b2"].size * 4
                        + B_pad * O_pad * 4),
    )

    out = pl.pallas_call(
        decoder_kernel,
        out_shape=jax.ShapeDtypeStruct((B_pad, O_pad), jnp.float32),
        grid_spec=pl.GridSpec(
            grid=grid,
            in_specs=[
                pl.BlockSpec((TB, Z), lambda i: (i, 0)),        # z: batch-tiled
                pl.BlockSpec((Z, H_pad), lambda i: (0, 0)),     # w1: VMEM-resident
                pl.BlockSpec((1, H_pad), lambda i: (0, 0)),     # b1: VMEM-resident
                pl.BlockSpec((H_pad, O_pad), lambda i: (0, 0)), # w2: VMEM-resident
                pl.BlockSpec((1, O_pad), lambda i: (0, 0)),     # b2: VMEM-resident
            ],
            out_specs=pl.BlockSpec((TB, O_pad), lambda i: (i, 0)),
        ),
        compiler_params=pltpu.CompilerParams(
            dimension_semantics=("parallel",),   # shards batch over v7x's 2 TCs
            vmem_limit_bytes=VMEM_CAP,           # <= 48 MiB: safe on all gens
        ),
        cost_estimate=cost,
    )(z_p, params["w1"], params["b1"], params["w2"], params["b2"])

    return out[:B, :O]


def decoder_forward(z, w1, b1, w2, b2, *, tb=512):
    """Convenience one-shot wrapper (prep + apply).  In production, call
    prepare_decoder_params once and reuse the result across forward calls."""
    return decoder_apply(z, prepare_decoder_params(w1, b1, w2, b2), tb=tb)


def decoder_reference(z, w1, b1, w2, b2):
    h = jax.nn.softplus(jnp.dot(z, w1) + b1.reshape(1, -1))
    return jnp.dot(h, w2) + b2.reshape(1, -1)


if __name__ == "__main__":
    # Small shapes consistent with the module: Decoder(obs_dim, hidden_dim, z_dim)
    batch, z_dim, hidden_dim, obs_dim = 8, 16, 32, 64

    key = jax.random.PRNGKey(0)
    k_z, k_w1, k_b1, k_w2, k_b2 = jax.random.split(key, 5)

    z = jax.random.normal(k_z, (batch, z_dim), dtype=jnp.float32)

    # Deterministic synthetic parameters (PyTorch shapes: fc1 [H,Z], fc21 [O,H];
    # stored transposed here for row-major matmul on the MXU).
    w1 = 0.1 * jax.random.normal(k_w1, (z_dim, hidden_dim), dtype=jnp.float32)
    b1 = 0.1 * jax.random.normal(k_b1, (hidden_dim,), dtype=jnp.float32)
    w2 = 0.1 * jax.random.normal(k_w2, (hidden_dim, obs_dim), dtype=jnp.float32)
    b2 = 0.1 * jax.random.normal(k_b2, (obs_dim,), dtype=jnp.float32)

    params = prepare_decoder_params(w1, b1, w2, b2)   # one-time pad/cast
    out = decoder_apply(z, params)
    out = jax.block_until_ready(out)

    ref = decoder_reference(z, w1, b1, w2, b2)
    assert out.shape == (batch, obs_dim), out.shape
    # bf16 MXU operands with f32 accumulation -> tolerance loosened vs pure f32.
    assert jnp.allclose(out, ref, atol=2e-2, rtol=2e-2), \
        f"max abs err {jnp.max(jnp.abs(out - ref))}"

    print("KERNEL_OK")
</pallas_src>

<mosaic_0001>
module attributes {stable_mosaic.version = 11 : i64} {
  func.func @decoder_kernel(%arg0: i32, %arg1: memref<16x16xf32, #tpu.memory_space<vmem>>, %arg2: memref<16x128xbf16, #tpu.memory_space<vmem>>, %arg3: memref<1x128xf32, #tpu.memory_space<vmem>>, %arg4: memref<128x128xbf16, #tpu.memory_space<vmem>>, %arg5: memref<1x128xf32, #tpu.memory_space<vmem>>, %arg6: memref<16x128xf32, #tpu.memory_space<vmem>>) attributes {dimension_semantics = [#tpu.dimension_semantics<parallel>], iteration_bounds = array<i64: 1>, scalar_prefetch = 0 : i64, scratch_operands = 0 : i64, tpu.core_type = #tpu.core_type<tc>, window_params = [{transform_indices = @transform_0, window_bounds = array<i64: 16, 16>}, {pipeline_mode = #tpu.pipeline_mode<synchronous>, transform_indices = @transform_1, window_bounds = array<i64: 16, 128>}, {pipeline_mode = #tpu.pipeline_mode<synchronous>, transform_indices = @transform_2, window_bounds = array<i64: 1, 128>}, {pipeline_mode = #tpu.pipeline_mode<synchronous>, transform_indices = @transform_3, window_bounds = array<i64: 128, 128>}, {pipeline_mode = #tpu.pipeline_mode<synchronous>, transform_indices = @transform_4, window_bounds = array<i64: 1, 128>}, {transform_indices = @transform_5, window_bounds = array<i64: 16, 128>}]} {
    %c0 = arith.constant 0 : index
    %c0_0 = arith.constant 0 : index
    %0 = vector.load %arg1[%c0, %c0_0] : memref<16x16xf32, #tpu.memory_space<vmem>>, vector<16x16xf32>
    %1 = arith.truncf %0 : vector<16x16xf32> to vector<16x16xbf16>
    %c0_1 = arith.constant 0 : index
    %c0_2 = arith.constant 0 : index
    %2 = vector.load %arg2[%c0_1, %c0_2] : memref<16x128xbf16, #tpu.memory_space<vmem>>, vector<16x128xbf16>
    %cst = arith.constant dense<0.000000e+00> : vector<16x128xf32>
    %3 = tpu.matmul %1, %2, %cst {dimension_numbers = #tpu.dot_dimension_numbers<[1], [0], [0], [1], [0, 0, 1, 1], [], []>} : vector<16x16xbf16>, vector<16x128xbf16>, vector<16x128xf32> -> vector<16x128xf32>
    %c0_3 = arith.constant 0 : index
    %c0_4 = arith.constant 0 : index
    %4 = vector.load %arg3[%c0_3, %c0_4] : memref<1x128xf32, #tpu.memory_space<vmem>>, vector<1x128xf32>
    %5 = vector.broadcast %4 : vector<1x128xf32> to vector<16x128xf32>
    %6 = arith.addf %3, %5 : vector<16x128xf32>
    %cst_5 = arith.constant 2.000000e+01 : f32
    %7 = vector.broadcast %cst_5 : f32 to vector<16x128xf32>
    %8 = arith.cmpf ogt, %6, %7 : vector<16x128xf32>
    %cst_6 = arith.constant 2.000000e+01 : f32
    %9 = vector.broadcast %cst_6 : f32 to vector<16x128xf32>
    %10 = arith.minimumf %6, %9 : vector<16x128xf32>
    %11 = math.exp %10 : vector<16x128xf32>
    %12 = math.log1p %11 : vector<16x128xf32>
    %13 = arith.select %8, %6, %12 : vector<16x128xi1>, vector<16x128xf32>
    %14 = arith.truncf %13 : vector<16x128xf32> to vector<16x128xbf16>
    %c0_7 = arith.constant 0 : index
    %c0_8 = arith.constant 0 : index
    %15 = vector.load %arg4[%c0_7, %c0_8] : memref<128x128xbf16, #tpu.memory_space<vmem>>, vector<128x128xbf16>
    %cst_9 = arith.constant dense<0.000000e+00> : vector<16x128xf32>
    %16 = tpu.matmul %14, %15, %cst_9 {dimension_numbers = #tpu.dot_dimension_numbers<[1], [0], [0], [1], [0, 0, 1, 1], [], []>} : vector<16x128xbf16>, vector<128x128xbf16>, vector<16x128xf32> -> vector<16x128xf32>
    %c0_10 = arith.constant 0 : index
    %c0_11 = arith.constant 0 : index
    %17 = vector.load %arg5[%c0_10, %c0_11] : memref<1x128xf32, #tpu.memory_space<vmem>>, vector<1x128xf32>
    %18 = vector.broadcast %17 : vector<1x128xf32> to vector<16x128xf32>
    %19 = arith.addf %16, %18 : vector<16x128xf32>
    %c0_12 = arith.constant 0 : index
    %c0_13 = arith.constant 0 : index
    %20 = vector.load %arg6[%c0_12, %c0_13] : memref<16x128xf32, #tpu.memory_space<vmem>>, vector<16x128xf32>
    tpu.vector_store %arg6[%c0_12, %c0_13], %19 {strides = array<i32>} : memref<16x128xf32, #tpu.memory_space<vmem>>, vector<16x128xf32>,
    return
  }
  func.func @transform_0(%arg0: i32) -> (i32, i32) {
    %c0_i32 = arith.constant 0 : i32
    %c0_i32_0 = arith.constant 0 : i32
    return %arg0, %c0_i32 : i32, i32
  }
  func.func @transform_1(%arg0: i32) -> (i32, i32) {
    %c0_i32 = arith.constant 0 : i32
    %c0_i32_0 = arith.constant 0 : i32
    %c0_i32_1 = arith.constant 0 : i32
    return %c0_i32, %c0_i32_0 : i32, i32
  }
  func.func @transform_2(%arg0: i32) -> (i32, i32) {
    %c0_i32 = arith.constant 0 : i32
    %c0_i32_0 = arith.constant 0 : i32
    %c0_i32_1 = arith.constant 0 : i32
    return %c0_i32, %c0_i32_0 : i32, i32
  }
  func.func @transform_3(%arg0: i32) -> (i32, i32) {
    %c0_i32 = arith.constant 0 : i32
    %c0_i32_0 = arith.constant 0 : i32
    %c0_i32_1 = arith.constant 0 : i32
    return %c0_i32, %c0_i32_0 : i32, i32
  }
  func.func @transform_4(%arg0: i32) -> (i32, i32) {
    %c0_i32 = arith.constant 0 : i32
    %c0_i32_0 = arith.constant 0 : i32
    %c0_i32_1 = arith.constant 0 : i32
    return %c0_i32, %c0_i32_0 : i32, i32
  }
  func.func @transform_5(%arg0: i32) -> (i32, i32) {
    %c0_i32 = arith.constant 0 : i32
    %c0_i32_0 = arith.constant 0 : i32
    return %arg0, %c0_i32 : i32, i32
  }
}

</mosaic_0001>

<bundles_post_ra>
// kernel: tpu_custom_call.1
= control target key start
LH: loop header
LB: loop body
LE: loop exit
PB: predicated region body
PF: predicated region fallthrough
CT: control target
= control target key end

     0   :  { %10 = vsyncpa [#allocation3], 0  ;;  %s513_s0 = inlined_call_operand.hbm [shape: f32[16,16], index: 0, kind: input, shape index: {}]   ;;  %s514_s1 = inlined_call_operand.hbm [shape: bf16[16,128], index: 1, kind: input, shape index: {}]   ;;  %s515_s2 = inlined_call_operand.vmem [shape: f32[1,128], index: 2, kind: input, shape index: {}]   ;;  %s516_s3 = inlined_call_operand.hbm [shape: bf16[128,128], index: 3, kind: input, shape index: {}]   ;;  %s517_s4 = inlined_call_operand.vmem [shape: f32[1,128], index: 4, kind: input, shape index: {}]   ;;  %s518_s5 = inlined_call_operand.hbm [shape: f32[16,128], index: 5, kind: output, shape index: {}]  }
   0x1   :  { %11 = vsyncpa [#allocation6], 0 }
   0x2   :  { %12 = vsyncpa [#allocation4], 0  ;;  %s449_s18 = smov [#allocation5]  }
   0x3   :  { %s30_s19 = sshll.u32 %s449_s18, 4  ;;  %s31_s19 = int_to_ptr.vmem [resolvable:$true] %s30_s19 }
   0x4   :  { %s371_s20 = scalar_lea.vmem %s31_s19, 128  ;;  %p376_p1 = scmp.lt.s32.totalorder %s31_s19, %s31_s19 }
   0x5   :  { %p372_p0 = scmp.ne.s32.totalorder %s31_s19, %s371_s20  ;;  %p377_p2 = scmp.lt.s32.totalorder %s371_s20, %s371_s20 }
   0x7   :  { %p378_p3 = por %p377_p2, %p376_p1 }
   0x9   :  { %p379_p4 = pnand %p378_p3, %p372_p0 }
   0xb   :  { %382 = shalt.err (!%p379_p4)
}
   0xc   :  { %s450_s21 = smov 64   ;;  %s451_s22 = smov 4  }
   0xd   :  { %36 = dma.hbm_to_vmem [thread:$0]  %s514_s1, 128, %s31_s19, [#allocation6], %s450_s21, %s450_s21, %s451_s22  }
   0xe   :  { %s452_s25 = smov [#allocation2]  }
   0xf   :  { %s18_s26 = sshll.u32 %s452_s25, 4  ;;  %s19_s26 = int_to_ptr.vmem [resolvable:$true] %s18_s26 }
  0x10   :  { %s391_s27 = scalar_lea.vmem %s19_s26, 256  ;;  %p396_p6 = scmp.lt.s32.totalorder %s19_s26, %s19_s26 }
  0x11   :  { %p392_p5 = scmp.ne.s32.totalorder %s19_s26, %s391_s27  ;;  %p397_p7 = scmp.lt.s32.totalorder %s391_s27, %s391_s27 }
  0x13   :  { %p398_p8 = por %p397_p7, %p396_p6 }
  0x15   :  { %p399_p9 = pnand %p398_p8, %p392_p5 }
  0x17   :  { %402 = shalt.err (!%p399_p9)
}
  0x18   :  { %s453_s28 = smov 128   ;;  %s454_s29 = smov 8  }
  0x19   :  { %24 = dma.hbm_to_vmem [thread:$0]  %s513_s0, 256, %s19_s26, [#allocation3], %s453_s28, %s453_s28, %s454_s29  }
  0x1a   :  { %s455_s1 = smov [#allocation7]  }
  0x1b   :  { %s44_s7 = sshll.u32 %s455_s1, 4  ;;  %s45_s7 = int_to_ptr.vmem [resolvable:$true] %s44_s7 }
  0x1c   :  { %s411_s8 = scalar_lea.vmem %s45_s7, 1024  ;;  %p416_p11 = scmp.lt.s32.totalorder %s45_s7, %s45_s7 }
  0x1d   :  { %p412_p10 = scmp.ne.s32.totalorder %s45_s7, %s411_s8  ;;  %p417_p12 = scmp.lt.s32.totalorder %s411_s8, %s411_s8 }
  0x1f   :  { %p418_p13 = por %p417_p12, %p416_p11 }
  0x21   :  { %p419_p0 = pnand %p418_p13, %p412_p10 }
  0x23   :  { %422 = shalt.err (!%p419_p0)
}
  0x24   :  { %50 = dma.hbm_to_vmem [thread:$0]  %s516_s3, 1024, %s45_s7, [#allocation6], %s450_s21, %s450_s21, %s451_s22  }
  0x25   :  { %443 = dma.done.wait [#allocation3], 256  }
  0x26   :  { %444 = vsyncadd [#allocation3], 4294967040 }
  0x27   :  { %445 = dma.done.wait [#allocation6], 1152  }
  0x28   :  { %446 = vsyncadd [#allocation6], 4294966144  ;;  %v456_v0 = vmov 0.0   ;;  %vm457_vm0 = vmmov 0   ;;  %v346_v1 = vld [vmem:[#allocation5] sm:$0xff]   ;;  %v63_v2 = vld [vmem:[#allocation2] sm:$0xff] }
  0x29   :  { %310 = vmatprep.subr.bf16.mxu0 %v456_v0  ;;  %312 = vmatprep.mubr.msk.bf16.mxu0 %vm457_vm0, %v456_v0  ;;  %v64_v3 = vld [vmem:[#allocation2 + $0x8] sm:$0xff]  ;;  %vm81_vm1 = vcmask 130048   ;;  %v347_v5 = vld [vmem:[#allocation7 + $0x38] sm:$0xff]   ;;  %v349_v7 = vld [vmem:[#allocation7 + $0x28] sm:$0xff]   ;;  %s458_s12 = smov [#allocation8]  }
  0x2a   :  { %316 = vmatprep.subr.bf16.mxu1 %v456_v0  ;;  %332 = vmatprep.mubr.msk.bf16.mxu1 %vm457_vm0, %v456_v0  ;;  %v65_v4 = vpack.c.bf16 %v64_v3, %v63_v2  ;;  %v348_v6 = vld [vmem:[#allocation7 + $0x30] sm:$0xff]   ;;  %v350_v8 = vld [vmem:[#allocation7 + $0x20] sm:$0xff]   ;;  %v351_v9 = vld [vmem:[#allocation7 + $0x18] sm:$0xff]   ;;  %s274_s13 = sshll.u32 %s458_s12, 4  ;;  %s275_s13 = int_to_ptr.vmem [resolvable:$true] %s274_s13 }
  0x2b   :  { %311 = vmatpush3.bf16.msra.mxu0 %v346_v1  ;;  %317 = vmatpush3.bf16.msra.mxu1 %v347_v5  ;;  %v352_v10 = vld [vmem:[#allocation7 + $0x10] sm:$0xff]   ;;  %v353_v11 = vld [vmem:[#allocation7 + $0x8] sm:$0xff]   ;;  %v354_v12 = vld [vmem:[#allocation7] sm:$0xff]   ;;  %s423_s14 = scalar_lea.vmem %s275_s13, 256  ;;  %p428_p2 = scmp.lt.s32.totalorder %s275_s13, %s275_s13 }
  0x2c   :  { %318 = vmatprep.subr.bf16.mxu1 %v456_v0  ;;  %v287_v13 = vld [vmem:[%s515_s2] ss:$0 sm:$0xff]  ;;  %p424_p1 = scmp.ne.s32.totalorder %s275_s13, %s423_s14  ;;  %p429_p3 = scmp.lt.s32.totalorder %s423_s14, %s423_s14 }
  0x2d   :  { %v290_v45 = vld [vmem:[%s517_s4] ss:$0 sm:$0xff] }
  0x2e   :  { %313 = vmatmul.mubr.msk.bf16.vlgmr.msra.gmra.mxu0 %vm81_vm1, %v65_v4  ;;  %p430_p4 = por %p429_p3, %p428_p2 }
  0x2f   :  { %319 = vmatpush3.bf16.msra.mxu1 %v348_v6 }
  0x30   :  { %320 = vmatprep.subr.bf16.mxu1 %v456_v0  ;;  %p431_p5 = pnand %p430_p4, %p424_p1 }
  0x33   :  { %321 = vmatpush3.bf16.msra.mxu1 %v349_v7 }
  0x34   :  { %322 = vmatprep.subr.bf16.mxu1 %v456_v0 }
  0x37   :  { %323 = vmatpush3.bf16.msra.mxu1 %v350_v8 }
  0x38   :  { %324 = vmatprep.subr.bf16.mxu1 %v456_v0 }
  0x3b   :  { %325 = vmatpush3.bf16.msra.mxu1 %v351_v9 }
  0x3c   :  { %326 = vmatprep.subr.bf16.mxu1 %v456_v0 }
  0x3f   :  { %327 = vmatpush3.bf16.msra.mxu1 %v352_v10 }
  0x40   :  { %328 = vmatprep.subr.bf16.mxu1 %v456_v0 }
  0x43   :  { %329 = vmatpush3.bf16.msra.mxu1 %v353_v11 }
  0x44   :  { %330 = vmatprep.subr.bf16.mxu1 %v456_v0 }
  0x47   :  { %331 = vmatpush3.bf16.msra.mxu1 %v354_v12 }
  0xee   :  { %v119_v14 = vpop.f32.mrf.mxu0 }
  0xef   :  { %v120_v15 = vadd.f32 %v287_v13, %v119_v14 }
  0xf0   :  { %v314_v16 = vpop.f32.mrf.mxu0 }
  0xf1   :  { %v128_v17 = vmin.f32 %v120_v15, 20.0  ;;  %vm126_vm4 = vcmp.gt.f32.partialorder %v120_v15, 20.0 }
  0xf2   :  { %v122_v18 = vpop.f32.mrf.mxu0 }
  0xf3   :  { %v130_v19 = vmul.f32 1.442695, %v128_v17  ;;  %v123_v20 = vadd.f32 %v287_v13, %v122_v18 }
  0xf4   :  { %v315_v21 = vpop.f32.mrf.mxu0 }
  0xf5   :  { %355 = vpow2.f32 %v130_v19  ;;  %v129_v22 = vmin.f32 %v123_v20, 20.0  ;;  %vm127_vm5 = vcmp.gt.f32.partialorder %v123_v20, 20.0 }
  0xf7   :  { %v132_v23 = vmul.f32 1.442695, %v129_v22 }
  0xf9   :  { %357 = vpow2.f32 %v132_v23 }
 0x102   :  { %v356_v24 = vpop.eup %355 }
 0x103   :  { %v134_v25 = vadd.f32 1.0, %v356_v24  ;;  %v137_v28 = vmul.f32 -0.5, %v356_v24  ;;  %v140_v32 = vand.u32 2147483647, %v356_v24 }
 0x105   :  { %359 = vlog2.f32 %v134_v25  ;;  %v138_v30 = vadd.f32 1.0, %v137_v28  ;;  %vm141_vm2 = vcmp.lt.f32.partialorder %v140_v32, 0.0004427343 }
 0x106   :  { %v358_v26 = vpop.eup %357 }
 0x107   :  { %v143_v27 = vadd.f32 1.0, %v358_v26  ;;  %v146_v29 = vmul.f32 -0.5, %v358_v26  ;;  %v149_v35 = vand.u32 2147483647, %v358_v26  ;;  %v139_v36 = vmul.f32 %v356_v24, %v138_v30 }
 0x109   :  { %361 = vlog2.f32 %v143_v27  ;;  %v147_v34 = vadd.f32 1.0, %v146_v29  ;;  %vm150_vm3 = vcmp.lt.f32.partialorder %v149_v35, 0.0004427343 }
 0x10b   :  { %v148_v40 = vmul.f32 %v358_v26, %v147_v34 }
 0x112   :  { %v360_v31 = vpop.eup %359 }
 0x113   :  { %v136_v33 = vmul.f32 0.6931472, %v360_v31 }
 0x115   :  { %v142_v38 = vsel %vm141_vm2, %v139_v36, %v136_v33 }
 0x116   :  { %v362_v37 = vpop.eup %361  ;;  %v152_v42 = vsel %vm126_vm4, %v120_v15, %v142_v38 }
 0x117   :  { %v145_v39 = vmul.f32 0.6931472, %v362_v37 }
 0x119   :  { %v151_v41 = vsel %vm150_vm3, %v148_v40, %v145_v39 }
 0x11a   :  { %v153_v43 = vsel %vm127_vm5, %v123_v20, %v151_v41 }
 0x11b   :  { %v154_v44 = vpack.c.bf16 %v153_v43, %v152_v42 }
 0x11d   :  { %333 = vmatmul.mubr.bf16.vlgmr.msra.gmra.mxu1 %v154_v44 }
 0x1dd   :  { %v260_v46 = vpop.f32.mrf.mxu1 }
 0x1de   :  { %v261_v47 = vadd.f32 %v290_v45, %v260_v46 }
 0x1df   :  { %v334_v48 = vpop.f32.mrf.mxu1 }
 0x1e0   :  { %267 = vst [vmem:[#allocation8] sm:$0xff] %v261_v47 }
 0x1e1   :  { %v263_v49 = vpop.f32.mrf.mxu1 }
 0x1e2   :  { %v264_v50 = vadd.f32 %v290_v45, %v263_v49 }
 0x1e3   :  { %v335_v51 = vpop.f32.mrf.mxu1 }
 0x1e4   :  { %268 = vst [vmem:[#allocation8 + $0x8] sm:$0xff] %v264_v50 }
 0x1e5   :  { %434 = shalt.err (!%p431_p5)
}
 0x1e6   :  { %280 = dma.vmem_to_hbm [thread:$0]  %s275_s13, 256, %s518_s5, [#allocation4], %s453_s28, %s453_s28, %s454_s29  }
 0x1e7   :  { %447 = dma.done.wait [#allocation4], 256  }
 0x1e8   :  { %448 = vsyncadd [#allocation4], 4294967040 }
 0x1e9   :  { %284 = vsyncpa [#allocation3], 1 }
 0x1ea   :  { %285 = vsyncpa [#allocation6], 1 }
 0x1eb   :  { %286 = vsyncpa [#allocation4], 1 }

</bundles_post_ra>
